<compile_context>
chip_gen: v5e
topology: v5e:2x2
jax: 0.10.0
libtpu: 0.0.40
codegen_flags: <defaults>
</compile_context>

<pallas_src>
import functools

import jax
import jax.numpy as jnp
from jax import lax
from jax.experimental import pallas as pl
from jax.experimental.pallas import tpu as pltpu


def _round_up(x, m):
    return ((x + m - 1) // m) * m


def _pick_p_tile(p, cap=1024):
    """Largest multiple-of-8 divisor of p that is <= cap (or p itself if p <= cap)."""
    if p <= cap:
        return p
    for tp in range(cap - (cap % 8), 7, -8):
        if p % tp == 0:
            return tp
    return p  # no clean divisor: fall back to untiled (block == full dim, still legal)


def _contract_block_kernel(patches_ref, w_ref, o_ref, sum_ref, *, eps, neg_slope, inv_p):
    """patches_ref: (TP, Kp) bf16; w_ref: (Kp, Cp) bf16;
       o_ref: (P, Cp) f32 resident per batch (doubles as the pre-norm accumulator);
       sum_ref: (1, Cp) f32 scratch (per-channel running sum)."""
    p_idx = pl.program_id(1)
    n_p = pl.num_programs(1)
    tp = patches_ref.shape[0]

    @pl.when(p_idx == 0)
    def _():
        sum_ref[...] = jnp.zeros_like(sum_ref)

    # Conv tile as MXU matmul: bf16 inputs, f32 accumulate. (Bias dropped — it
    # cancels under InstanceNorm's mean subtraction.)
    tile = jnp.dot(patches_ref[...], w_ref[...], preferred_element_type=jnp.float32)

    # Stash the pre-norm tile in the resident f32 output block.
    row0 = pl.multiple_of(p_idx * tp, tp)
    o_ref[pl.ds(row0, tp), :] = tile
    # Fold the per-channel sum into the tile epilogue.
    sum_ref[...] += jnp.sum(tile, axis=0, keepdims=True)

    @pl.when(p_idx == n_p - 1)
    def _():
        # InstanceNorm2d (affine=False): per-channel mean/var over the spatial axis,
        # biased variance, eps=1e-5. Two-pass variance over the resident VMEM block.
        mean = sum_ref[...] * inv_p                       # [1, Cp]
        pre = o_ref[...]                                  # [P, Cp] (VMEM-resident)
        diff = pre - mean
        var = jnp.mean(diff * diff, axis=0, keepdims=True)
        y = diff * lax.rsqrt(var + eps)
        # LeakyReLU(0.2): single VPU max instead of compare+select.
        o_ref[...] = jnp.maximum(y, neg_slope * y)


def contracting_block_disc(x, weight, bias=None, *, stride=2, padding=1,
                           eps=1e-5, neg_slope=0.2, compute_dtype=jnp.bfloat16):
    """x: [N, C_in, H, W] (NCHW, float32). weight: [C_out, C_in, kh, kw]. bias: [C_out] or None.

    Note: `bias` is accepted for API parity with the PyTorch module but is not used —
    InstanceNorm2d(affine=False) subtracts the per-channel mean immediately after the
    conv, so a per-channel bias cancels exactly.
    """
    del bias  # mathematically a no-op under InstanceNorm(affine=False)

    N, C_in, H, W = x.shape
    C_out, _, kh, kw = weight.shape

    # ---- glue: reflect padding + im2col (plain JAX), materialized in bf16 ----
    xp = jnp.pad(x, ((0, 0), (0, 0), (padding, padding), (padding, padding)),
                 mode="reflect").astype(compute_dtype)
    H_out = (H + 2 * padding - kh) // stride + 1
    W_out = (W + 2 * padding - kw) // stride + 1

    cols = []
    for i in range(kh):
        for j in range(kw):
            cols.append(xp[:, :, i:i + stride * H_out:stride,
                              j:j + stride * W_out:stride])       # [N, C_in, H_out, W_out]
    # order (C_in, kh, kw) matches weight.reshape(C_out, C_in*kh*kw)
    patches = jnp.stack(cols, axis=2)                             # [N, C_in, kh*kw, H_out, W_out]
    patches = patches.reshape(N, C_in * kh * kw, H_out * W_out)
    patches = jnp.transpose(patches, (0, 2, 1))                   # [N, P, K] bf16

    P = H_out * W_out
    K = C_in * kh * kw
    Kp = _round_up(K, 128)       # lane-aligned contraction dim
    Cp = _round_up(C_out, 128)   # lane-dense output channels

    patches = jnp.pad(patches, ((0, 0), (0, 0), (0, Kp - K)))
    w_mat = weight.reshape(C_out, K).T                            # [K, C_out]
    w_mat = jnp.pad(w_mat, ((0, Kp - K), (0, Cp - C_out))).astype(compute_dtype)

    TP = _pick_p_tile(P, cap=1024)
    NP = P // TP

    # VMEM budget: patches tiles + weights (double-buffered, bf16), resident f32
    # output block (double-buffered across batch), small stats scratch.
    cb = jnp.dtype(compute_dtype).itemsize
    est = (2 * TP * Kp * cb + 2 * Kp * Cp * cb + 2 * P * Cp * 4 + 8 * Cp * 4)
    vmem_limit = int(min(max(2 * est, 32 * 1024 * 1024), 48 * 1024 * 1024))

    kernel = functools.partial(_contract_block_kernel, eps=eps,
                               neg_slope=neg_slope, inv_p=1.0 / float(P))

    out = pl.pallas_call(
        kernel,
        out_shape=jax.ShapeDtypeStruct((N, P, Cp), jnp.float32),
        grid_spec=pltpu.PrefetchScalarGridSpec(
            num_scalar_prefetch=0,
            grid=(N, NP),
            in_specs=[
                pl.BlockSpec((pl.Squeezed(), TP, Kp), lambda b, p: (b, p, 0)),
                pl.BlockSpec((Kp, Cp), lambda b, p: (0, 0)),
            ],
            out_specs=pl.BlockSpec((pl.Squeezed(), P, Cp), lambda b, p: (b, 0, 0)),
            scratch_shapes=[pltpu.VMEM((1, Cp), jnp.float32)],
        ),
        compiler_params=pltpu.CompilerParams(
            dimension_semantics=("parallel", "arbitrary"),
            vmem_limit_bytes=vmem_limit),
    )(patches, w_mat)

    # Drop channel padding; back to NCHW (kept for PyTorch parity — skip this
    # transpose if the consumer can take [N, P, C_out] / NHWC directly).
    out = out[:, :, :C_out]
    out = jnp.transpose(out, (0, 2, 1)).reshape(N, C_out, H_out, W_out)
    return out


def _reference(x, weight, bias, *, stride=2, padding=1, eps=1e-5, neg_slope=0.2,
               compute_dtype=jnp.float32):
    """Pure-JAX reference. `compute_dtype` rounds the conv inputs (to mirror the
    kernel's bf16 MXU inputs) while accumulating in f32."""
    xc = x.astype(compute_dtype).astype(jnp.float32)
    wc = weight.astype(compute_dtype).astype(jnp.float32)
    xp = jnp.pad(xc, ((0, 0), (0, 0), (padding, padding), (padding, padding)),
                 mode="reflect")
    y = lax.conv_general_dilated(
        xp, wc, window_strides=(stride, stride), padding="VALID",
        dimension_numbers=("NCHW", "OIHW", "NCHW"),
        preferred_element_type=jnp.float32)
    if bias is not None:
        y = y + bias.reshape(1, -1, 1, 1)
    mean = jnp.mean(y, axis=(2, 3), keepdims=True)
    var = jnp.mean((y - mean) ** 2, axis=(2, 3), keepdims=True)
    y = (y - mean) * lax.rsqrt(var + eps)
    return jnp.where(y >= 0, y, neg_slope * y)


if __name__ == "__main__":
    key = jax.random.PRNGKey(0)
    k_x, k_w, k_b = jax.random.split(key, 3)

    N, C_in, H, W = 2, 4, 16, 16
    C_out, kh, kw = 8, 4, 4

    x = jax.random.normal(k_x, (N, C_in, H, W), dtype=jnp.float32)
    weight = jax.random.normal(k_w, (C_out, C_in, kh, kw), dtype=jnp.float32) * 0.1
    bias = jax.random.normal(k_b, (C_out,), dtype=jnp.float32) * 0.1

    out = contracting_block_disc(x, weight, bias)
    out = jax.block_until_ready(out)

    assert out.shape == (N, C_out, H // 2, W // 2), out.shape

    # Tight check vs. a reference with the same bf16-rounded conv inputs
    # (bias included there — it cancels under InstanceNorm, as exploited in the kernel).
    ref_bf16 = _reference(x, weight, bias, compute_dtype=jnp.bfloat16)
    err_bf16 = float(jnp.max(jnp.abs(out - ref_bf16)))
    assert err_bf16 < 1e-3, err_bf16

    # Looser sanity check vs. the full-f32 reference (bounds the bf16 matmul error).
    ref_f32 = _reference(x, weight, bias, compute_dtype=jnp.float32)
    err_f32 = float(jnp.max(jnp.abs(out - ref_f32)))
    assert err_f32 < 5e-2, err_f32

    print("KERNEL_OK")
</pallas_src>

<mosaic_0001>
module attributes {stable_mosaic.version = 11 : i64} {
  func.func @_contract_block_kernel(%arg0: i32, %arg1: i32, %arg2: memref<1x64x128xbf16, #tpu.memory_space<vmem>>, %arg3: memref<128x128xbf16, #tpu.memory_space<vmem>>, %arg4: memref<1x64x128xf32, #tpu.memory_space<vmem>>, %arg5: memref<1x128xf32, #tpu.memory_space<vmem>>) attributes {dimension_semantics = [#tpu.dimension_semantics<parallel>, #tpu.dimension_semantics<arbitrary>], iteration_bounds = array<i64: 2, 1>, scalar_prefetch = 0 : i64, scratch_operands = 1 : i64, tpu.core_type = #tpu.core_type<tc>, window_params = [{transform_indices = @transform_0, window_bounds = array<i64: 1, 64, 128>}, {pipeline_mode = #tpu.pipeline_mode<synchronous>, transform_indices = @transform_1, window_bounds = array<i64: 128, 128>}, {transform_indices = @transform_2, window_bounds = array<i64: 1, 64, 128>}]} {
    %c0_i32 = arith.constant 0 : i32
    %0 = arith.cmpi eq, %arg1, %c0_i32 : i32
    %1 = arith.extui %0 : i1 to i32
    %c0_i32_0 = arith.constant 0 : i32
    %2 = arith.cmpi ne, %1, %c0_i32_0 : i32
    scf.if %2 {
      %cst_14 = arith.constant 0.000000e+00 : f32
      %21 = vector.broadcast %cst_14 : f32 to vector<1x128xf32>
      %c0_15 = arith.constant 0 : index
      %c0_16 = arith.constant 0 : index
      %22 = vector.load %arg5[%c0_15, %c0_16] : memref<1x128xf32, #tpu.memory_space<vmem>>, vector<1x128xf32>
      tpu.vector_store %arg5[%c0_15, %c0_16], %21 {strides = array<i32>} : memref<1x128xf32, #tpu.memory_space<vmem>>, vector<1x128xf32>,
    } else {
    }
    %c0 = arith.constant 0 : index
    %c0_1 = arith.constant 0 : index
    %c0_2 = arith.constant 0 : index
    %3 = vector.load %arg2[%c0, %c0_1, %c0_2] : memref<1x64x128xbf16, #tpu.memory_space<vmem>>, vector<1x64x128xbf16>
    %4 = vector.shape_cast %3 : vector<1x64x128xbf16> to vector<64x128xbf16>
    %c0_3 = arith.constant 0 : index
    %c0_4 = arith.constant 0 : index
    %5 = vector.load %arg3[%c0_3, %c0_4] : memref<128x128xbf16, #tpu.memory_space<vmem>>, vector<128x128xbf16>
    %cst = arith.constant dense<0.000000e+00> : vector<64x128xf32>
    %6 = tpu.matmul %4, %5, %cst {dimension_numbers = #tpu.dot_dimension_numbers<[1], [0], [0], [1], [0, 0, 1, 1], [], []>} : vector<64x128xbf16>, vector<128x128xbf16>, vector<64x128xf32> -> vector<64x128xf32>
    %c64_i32 = arith.constant 64 : i32
    %7 = arith.muli %arg1, %c64_i32 : i32
    %8 = tpu.assume_multiple %7, 64 : i32
    %c0_5 = arith.constant 0 : index
    %9 = arith.index_cast %8 : i32 to index
    %c0_6 = arith.constant 0 : index
    %10 = vector.load %arg4[%c0_5, %9, %c0_6] : memref<1x64x128xf32, #tpu.memory_space<vmem>>, vector<1x64x128xf32>
    %11 = vector.shape_cast %10 : vector<1x64x128xf32> to vector<64x128xf32>
    %12 = vector.shape_cast %6 : vector<64x128xf32> to vector<1x64x128xf32>
    tpu.vector_store %arg4[%c0_5, %9, %c0_6], %12 {strides = array<i32>} : memref<1x64x128xf32, #tpu.memory_space<vmem>>, vector<1x64x128xf32>,
    %c0_7 = arith.constant 0 : index
    %c0_8 = arith.constant 0 : index
    %13 = vector.load %arg5[%c0_7, %c0_8] : memref<1x128xf32, #tpu.memory_space<vmem>>, vector<1x128xf32>
    %cst_9 = arith.constant dense<0.000000e+00> : vector<128xf32>
    %14 = vector.multi_reduction <add>, %6, %cst_9 [0] : vector<64x128xf32> to vector<128xf32>
    %15 = vector.shape_cast %14 : vector<128xf32> to vector<1x128xf32>
    %16 = arith.addf %13, %15 : vector<1x128xf32>
    %c0_10 = arith.constant 0 : index
    %c0_11 = arith.constant 0 : index
    %17 = vector.load %arg5[%c0_10, %c0_11] : memref<1x128xf32, #tpu.memory_space<vmem>>, vector<1x128xf32>
    tpu.vector_store %arg5[%c0_10, %c0_11], %16 {strides = array<i32>} : memref<1x128xf32, #tpu.memory_space<vmem>>, vector<1x128xf32>,
    %c0_i32_12 = arith.constant 0 : i32
    %18 = arith.cmpi eq, %arg1, %c0_i32_12 : i32
    %19 = arith.extui %18 : i1 to i32
    %c0_i32_13 = arith.constant 0 : i32
    %20 = arith.cmpi ne, %19, %c0_i32_13 : i32
    scf.if %20 {
      %c0_14 = arith.constant 0 : index
      %c0_15 = arith.constant 0 : index
      %21 = vector.load %arg5[%c0_14, %c0_15] : memref<1x128xf32, #tpu.memory_space<vmem>>, vector<1x128xf32>
      %cst_16 = arith.constant 1.562500e-02 : f32
      %22 = vector.broadcast %cst_16 : f32 to vector<1x128xf32>
      %23 = arith.mulf %21, %22 : vector<1x128xf32>
      %c0_17 = arith.constant 0 : index
      %c0_18 = arith.constant 0 : index
      %c0_19 = arith.constant 0 : index
      %24 = vector.load %arg4[%c0_17, %c0_18, %c0_19] : memref<1x64x128xf32, #tpu.memory_space<vmem>>, vector<1x64x128xf32>
      %25 = vector.shape_cast %24 : vector<1x64x128xf32> to vector<64x128xf32>
      %26 = vector.broadcast %23 : vector<1x128xf32> to vector<64x128xf32>
      %27 = arith.subf %25, %26 : vector<64x128xf32>
      %28 = arith.mulf %27, %27 : vector<64x128xf32>
      %cst_20 = arith.constant dense<0.000000e+00> : vector<128xf32>
      %29 = vector.multi_reduction <add>, %28, %cst_20 [0] : vector<64x128xf32> to vector<128xf32>
      %30 = vector.shape_cast %29 : vector<128xf32> to vector<1x128xf32>
      %cst_21 = arith.constant 6.400000e+01 : f32
      %31 = vector.broadcast %cst_21 : f32 to vector<1x128xf32>
      %32 = arith.divf %30, %31 : vector<1x128xf32>
      %cst_22 = arith.constant 9.99999974E-6 : f32
      %33 = vector.broadcast %cst_22 : f32 to vector<1x128xf32>
      %34 = arith.addf %32, %33 : vector<1x128xf32>
      %35 = math.rsqrt %34 : vector<1x128xf32>
      %36 = vector.broadcast %35 : vector<1x128xf32> to vector<64x128xf32>
      %37 = arith.mulf %27, %36 : vector<64x128xf32>
      %cst_23 = arith.constant 2.000000e-01 : f32
      %38 = vector.broadcast %cst_23 : f32 to vector<64x128xf32>
      %39 = arith.mulf %38, %37 : vector<64x128xf32>
      %40 = arith.maximumf %37, %39 : vector<64x128xf32>
      %c0_24 = arith.constant 0 : index
      %c0_25 = arith.constant 0 : index
      %c0_26 = arith.constant 0 : index
      %41 = vector.load %arg4[%c0_24, %c0_25, %c0_26] : memref<1x64x128xf32, #tpu.memory_space<vmem>>, vector<1x64x128xf32>
      %42 = vector.shape_cast %41 : vector<1x64x128xf32> to vector<64x128xf32>
      %43 = vector.shape_cast %40 : vector<64x128xf32> to vector<1x64x128xf32>
      tpu.vector_store %arg4[%c0_24, %c0_25, %c0_26], %43 {strides = array<i32>} : memref<1x64x128xf32, #tpu.memory_space<vmem>>, vector<1x64x128xf32>,
    } else {
    }
    return
  }
  func.func @transform_0(%arg0: i32, %arg1: i32) -> (i32, i32, i32) {
    %c0_i32 = arith.constant 0 : i32
    %c0_i32_0 = arith.constant 0 : i32
    return %arg0, %arg1, %c0_i32 : i32, i32, i32
  }
  func.func @transform_1(%arg0: i32, %arg1: i32) -> (i32, i32) {
    %c0_i32 = arith.constant 0 : i32
    %c0_i32_0 = arith.constant 0 : i32
    %c0_i32_1 = arith.constant 0 : i32
    return %c0_i32, %c0_i32_0 : i32, i32
  }
  func.func @transform_2(%arg0: i32, %arg1: i32) -> (i32, i32, i32) {
    %c0_i32 = arith.constant 0 : i32
    %c0_i32_0 = arith.constant 0 : i32
    %c0_i32_1 = arith.constant 0 : i32
    return %arg0, %c0_i32, %c0_i32_0 : i32, i32, i32
  }
}

</mosaic_0001>

<bundles_post_ra>
// kernel: tpu_custom_call.1
= control target key start
LH: loop header
LB: loop body
LE: loop exit
PB: predicated region body
PF: predicated region fallthrough
CT: control target
= control target key end

     0   :  { %7 = vsyncpa [#allocation4], 0  ;;  %s1080_s0 = inlined_call_operand.hbm [shape: bf16[2,64,128], index: 0, kind: input, shape index: {}]   ;;  %s1081_s1 = inlined_call_operand.hbm [shape: bf16[128,128], index: 1, kind: input, shape index: {}]   ;;  %s1082_s2 = inlined_call_operand.hbm [shape: f32[2,64,128], index: 2, kind: output, shape index: {}]  }
   0x1   :  { %9 = vsyncpa [#allocation4 + $0x1], 0 }
   0x2   :  { %10 = vsyncpa [#allocation7], 0 }
   0x3   :  { %11 = vsyncpa [#allocation5], 0 }
   0x4   :  { %13 = vsyncpa [#allocation5 + $0x1], 0  ;;  %s918_s9 = smov 0   ;;  %s920_s10 = smov 0  }
   0x5   :  { %s922_s11 = smov 0   ;;  %s924_s12 = smov 0  }
   0x6   :  { %s926_s13 = smov 0   ;;  %s928_s14 = smov 0  }
   0x7 LB: > { %s562_s15 = sadd.s32 4294967295, %s894_s14   ;;  %s563_s16 = sadd.s32 4294967294, %s894_s14   ;;  %s894_s14 = sphi %s928_s14, %s19_s14   ;;  %s890_s13 = sphi %s926_s13, %s1094_s13   ;;  %s886_s12 = sphi %s924_s12, %s1093_s12   ;;  %s882_s11 = sphi %s922_s11, %s1092_s11   ;;  %s878_s10 = sphi %s920_s10, %s1091_s10   ;;  %s874_s9 = sphi %s918_s9, %s1090_s9  }
   0x8   : > { %p53_p0 = scmp.ne.s32.totalorder %s878_s10, %s874_s9  ;;  %p952_p1 = scmp.eq.s32.totalorder %s562_s15, 0 }
   0x9   : > { %p956_p2 = scmp.eq.s32.totalorder %s562_s15, 1  ;;  %p104_p3 = scmp.eq.s32.totalorder %s563_s16, 1 }
   0xa   : > { %p962_p4 = por %p952_p1, %p53_p0  ;;  %p564_p5 = scmp.ge.s32.totalorder %s894_s14, 1 }
   0xb   : > { %p967_p6 = por %p104_p3, %p53_p0  ;;  %p111_p7 = scmp.lt.s32.totalorder %s894_s14, 3 }
   0xc   : > { %s122_s23 = sshll.u32 %s1081_s1, 4  ;;  %s896_s25 = smov [#allocation6]   ;;  %s123_s23 = int_to_ptr.hbm [resolvable:$true] %s122_s23 }
   0xd   : > { %p975_p8 = pnand %p564_p5, %p111_p7  ;;  %s124_s26 = sshll.u32 %s896_s25, 4  ;;  %s125_s26 = int_to_ptr.vmem [resolvable:$true] %s124_s26 }
   0xe   : > { %p566_p11 = scmp.ge.s32.totalorder %s894_s14, 2  ;;  %s897_s27 = smov 64  }
   0xf   : > { %p673_p9 = pneg %p975_p8  ;;  %s898_s28 = smov 4  }
  0x10   : > { %s31_s29 = sadd.s32 1, %s890_s13  ;;  %s40_s30 = sadd.s32 1, %s882_s11 }
  0x11   : > { %p674_p10 = pnand %p673_p9, %p952_p1  ;;  %p33_p12 = scmp.ge.s32.totalorder %s31_s29, 2 }
  0x12   : > { %p47_p13 = scmp.ne.s32.totalorder %s882_s11, %s878_s10  ;;  %p48_p0 = scmp.eq.s32.totalorder %s894_s14, 0 }
  0x13   : > { %676 = dma.hbm_to_vmem [thread:$0]  (!%p674_p10), %s123_s23, 1024, %s125_s26, [#allocation7], %s897_s27, %s897_s27, %s898_s28  }
  0x14   : > { %s1096_s29 = smov (%p33_p12, %s31_s29), 0  ;;  %p994_p3 = por %p48_p0, %p47_p13 }
  0x15   : > { %p1000_p5 = por %p956_p2, %p47_p13  ;;  %s35_s5 = ssub.s32 %s890_s13, %s1096_s29 }
  0x16   : > { %p686_p7 = scmp.lt.s32.totalorder %s894_s14, 2  ;;  %p38_p9 = scmp.eq.s32.totalorder %s35_s5, 0 }
  0x17   : > { %s138_s6 = sand.u32 1, %s882_s11   ;;  %s627_s15 = sshll.u32 %s890_s13, 5 }
  0x18   : > { %s567_s7 = sshll.u32 %s138_s6, 5  ;;  %s149_s22 = scalar_lea.hbm %s1080_s0, %s627_s15 }
  0x19   : > { %s1009_s8 = scalar_select %p38_p9, %s882_s11, %s40_s30  }
  0x1a   : > { %s142_s23 = scalar_lea.vmem [#allocation3], %s567_s7  ;;  %s150_s18 = sshll.u32 %s149_s22, 4  ;;  %s151_s18 = int_to_ptr.hbm [resolvable:$true] %s150_s18 }
  0x1b   : > { %s152_s25 = sshll.u32 %s142_s23, 4  ;;  %p678_p2 = pnand %p686_p7, %p994_p3  ;;  %s153_s25 = int_to_ptr.vmem [resolvable:$true] %s152_s25 }
  0x1c   : > { %s139_s26 = scalar_lea.sflag [#allocation4], %s138_s6  ;;  %164 = sbr.rel (%p975_p8) target bundleno = 311 (0x137), region = 28 }
  0x1d   : > { %680 = dma.hbm_to_vmem [thread:$0]  (!%p678_p2), %s151_s18, 512, %s153_s25, %s139_s26, %s897_s27, %s897_s27, %s898_s28  }
  0x1e   : > { %s1023_s30 = sand.u32 (!%p975_p8), 1, %s878_s10  }
  0x1f   : > { %s571_s5 = sshll.u32 (!%p975_p8), %s1023_s30, 5  ;;  %s167_s7 = scalar_lea.sflag (!%p975_p8), [#allocation4], %s1023_s30 }
  0x20   : > { %s1027_s15 = scalar_lea.vmem (!%p975_p8), [#allocation3], %s571_s5 }
  0x21   : > { %861 = dma.done.wait (%p962_p4), %s167_s7, 512  }
  0x22   : > { %863 = vsyncadd (%p962_p4), %s167_s7, 4294966784 }
  0x23   : > { %865 = dma.done.wait (%p952_p1), [#allocation7], 1024  }
  0x24   : > { %867 = vsyncadd (%p952_p1), [#allocation7], 4294966272  ;;  %v639_v0 = vld [vmem:[#allocation6 + $0x38] sm:$0xff]  ;;  %v638_v1 = vld [vmem:[#allocation6 + $0x30] sm:$0xff]  ;;  %v899_v12 = vmov 0.0   ;;  %v900_v45 = vmov 64.0  }
  0x25   : > { %299 = vmatpush.bf16.msra.mxu0 %v639_v0  ;;  %641 = vmatpush.bf16.msra.mxu1 %v639_v0  ;;  %v637_v2 = vld [vmem:[#allocation6 + $0x28] sm:$0xff]  ;;  %v636_v3 = vld [vmem:[#allocation6 + $0x20] sm:$0xff]  ;;  %v635_v4 = vld [vmem:[#allocation6 + $0x18] sm:$0xff]  ;;  %202 = vst [vmem:[#allocation2] sm:$0x1] %v899_v12  ;;  %744 = vrcp.f32 %v900_v45  ;;  %s573_s17 = sshll.u32 %s1023_s30, 6 }
  0x26   : > { %642 = vmatpush.bf16.msra.mxu2 %v639_v0  ;;  %643 = vmatpush.bf16.msra.mxu3 %v639_v0  ;;  %v634_v5 = vld [vmem:[#allocation6 + $0x10] sm:$0xff]  ;;  %v633_v6 = vld [vmem:[#allocation6 + $0x8] sm:$0xff]  ;;  %v632_v7 = vld [vmem:[#allocation6] sm:$0xff]  ;;  %s640_s19 = sshll.u32 %s886_s12, 6  ;;  %s196_s3 = scalar_lea.vmem [#allocation8], %s573_s17 }
  0x27   : > { %v628_v8 = vld [vmem:[%s1027_s15] sm:$0xff]  ;;  %v629_v9 = vld [vmem:[%s1027_s15 + $0x8] sm:$0xff]  ;;  %v630_v10 = vld [vmem:[%s1027_s15 + $0x10] sm:$0xff]  ;;  %s462_s28 = scalar_lea.hbm %s1082_s2, %s640_s19  ;;  %s463_s12 = sshll.u32 %s196_s3, 4  ;;  %s464_s12 = int_to_ptr.vmem [resolvable:$true] %s463_s12 }
  0x28   : > { %v631_v11 = vld [vmem:[%s1027_s15 + $0x18] sm:$0xff]  ;;  %s465_s6 = sshll.u32 %s462_s28, 4  ;;  %s451_s16 = scalar_lea.sflag [#allocation5], %s1023_s30  ;;  %s466_s6 = int_to_ptr.hbm [resolvable:$true] %s465_s6 }
  0x29   : > { %300 = vmatpush.bf16.msra.mxu0 %v638_v1  ;;  %644 = vmatpush.bf16.msra.mxu1 %v638_v1  ;;  %s822_s21 = sshra.s32 %s466_s6, 4  ;;  %s828_s18 = scalar_lea.hbm %s1082_s2, 128  ;;  %s823_s21 = int_to_ptr.hbm [resolvable:$true] %s822_s21 }
  0x2a   : > { %645 = vmatpush.bf16.msra.mxu2 %v638_v1  ;;  %646 = vmatpush.bf16.msra.mxu3 %v638_v1  ;;  %s824_s22 = scalar_lea.hbm %s823_s21, 64  ;;  %p829_p10 = scmp.lt.s32.totalorder %s823_s21, %s1082_s2 }
  0x2b   : > { %v745_v52 = vpop.eup %744  ;;  %p825_p1 = scmp.ne.s32.totalorder %s823_s21, %s824_s22  ;;  %p830_p12 = scmp.lt.s32.totalorder %s828_s18, %s824_s22 }
  0x2c   : > { %v338_v33 = vld [vmem:[#allocation2] sm:$0x1]  ;;  %v400_v59 = vmul.f32 64.0, %v745_v52  ;;  %vm404_vm0 = vweird.f32 %v745_v52 }
  0x2d   : > { %301 = vmatpush.bf16.msra.mxu0 %v637_v2  ;;  %647 = vmatpush.bf16.msra.mxu1 %v637_v2  ;;  %p826_p4 = pnand %p825_p1, %p1000_p5  ;;  %p831_p13 = por %p830_p12, %p829_p10 }
  0x2e   : > { %648 = vmatpush.bf16.msra.mxu2 %v637_v2  ;;  %649 = vmatpush.bf16.msra.mxu3 %v637_v2  ;;  %v401_v0 = vsub.f32 1.0, %v400_v59 }
  0x2f   : > { %p827_p8 = pneg %p826_p4 }
  0x31   : > { %302 = vmatpush.bf16.msra.mxu0 %v636_v3  ;;  %650 = vmatpush.bf16.msra.mxu1 %v636_v3  ;;  %p832_p0 = pnand %p831_p13, %p827_p8 }
  0x32   : > { %651 = vmatpush.bf16.msra.mxu2 %v636_v3  ;;  %652 = vmatpush.bf16.msra.mxu3 %v636_v3  ;;  %v402_v3 = vmul.f32 %v745_v52, %v401_v0 }
  0x35   : > { %303 = vmatpush.bf16.msra.mxu0 %v635_v4  ;;  %653 = vmatpush.bf16.msra.mxu1 %v635_v4 }
  0x36   : > { %654 = vmatpush.bf16.msra.mxu2 %v635_v4  ;;  %655 = vmatpush.bf16.msra.mxu3 %v635_v4 }
  0x39   : > { %304 = vmatpush.bf16.msra.mxu0 %v634_v5  ;;  %656 = vmatpush.bf16.msra.mxu1 %v634_v5 }
  0x3a   : > { %657 = vmatpush.bf16.msra.mxu2 %v634_v5  ;;  %658 = vmatpush.bf16.msra.mxu3 %v634_v5 }
  0x3d   : > { %305 = vmatpush.bf16.msra.mxu0 %v633_v6  ;;  %659 = vmatpush.bf16.msra.mxu1 %v633_v6 }
  0x3e   : > { %660 = vmatpush.bf16.msra.mxu2 %v633_v6  ;;  %661 = vmatpush.bf16.msra.mxu3 %v633_v6  ;;  %v403_v6 = vadd.f32 %v745_v52, %v402_v3 }
  0x41   : > { %306 = vmatpush.bf16.msra.mxu0 %v632_v7  ;;  %662 = vmatpush.bf16.msra.mxu1 %v632_v7 }
  0x42   : > { %663 = vmatpush.bf16.msra.mxu2 %v632_v7  ;;  %664 = vmatpush.bf16.msra.mxu3 %v632_v7 }
  0x44   : > { %307 = vmatmul.bf16.vlgmr.msra.gmra.mxu0 %v628_v8  ;;  %312 = vmatmul.bf16.vlgmr.msra.gmra.mxu1 %v629_v9  ;;  %v405_v9 = vsel %vm404_vm0, %v745_v52, %v403_v6 }
  0x45   : > { %317 = vmatmul.bf16.vlgmr.msra.gmra.mxu2 %v630_v10  ;;  %322 = vmatmul.bf16.vlgmr.msra.gmra.mxu3 %v631_v11 }
  0xc1   : > { %v308_v13 = vpop.f32.mrf.mxu0  ;;  %v313_v14 = vpop.f32.mrf.mxu1 }
  0xc8   : > { %v318_v15 = vpop.f32.mrf.mxu2  ;;  %v323_v18 = vpop.f32.mrf.mxu3 }
  0xc9   : > { %v310_v16 = vpop.f32.mrf.mxu0  ;;  %v315_v20 = vpop.f32.mrf.mxu1 }
  0xca   : > { %v339_v17 = vadd.f32 %v310_v16, %v308_v13 }
  0xcc   : > { %v340_v19 = vadd.f32 %v339_v17, %v313_v14 }
  0xce   : > { %v341_v21 = vadd.f32 %v340_v19, %v315_v20 }
  0xd0   : > { %v342_v22 = vadd.f32 %v341_v21, %v318_v15  ;;  %v320_v23 = vpop.f32.mrf.mxu2  ;;  %v325_v26 = vpop.f32.mrf.mxu3 }
  0xd2   : > { %v343_v24 = vadd.f32 %v342_v22, %v320_v23 }
  0xd4   : > { %v344_v25 = vadd.f32 %v343_v24, %v323_v18 }
  0xd6   : > { %v345_v27 = vadd.f32 %v344_v25, %v325_v26 }
  0xd8   : > { %v346_v28 = vrot.slane %v345_v27, 4 }
  0xda   : > { %v347_v29 = vadd.f32 %v346_v28, %v345_v27 }
  0xdc   : > { %v348_v30 = vrot.slane %v347_v29, 2 }
  0xde   : > { %v349_v31 = vadd.f32 %v348_v30, %v347_v29 }
  0xe0   : > { %v350_v32 = vrot.slane %v349_v31, 1 }
  0xe2   : > { %v351_v34 = vadd.f32 %v350_v32, %v349_v31 }
  0xe4   : > { %v352_v35 = vadd.f32 %v351_v34, %v338_v33 }
  0xe6   : > { %353 = vst [vmem:[#allocation2] sm:$0x1] %v352_v35 }
  0xed   : > { %v357_v36 = vld [vmem:[#allocation2] sm:$0x1] }
  0xee   : > { %v358_v37 = vmul.f32 0.015625, %v357_v36 }
  0xf0   : > { %v368_v38 = vperm.slane %v358_v37, 0 }
  0xf2   : > { %v370_v39 = vsub.f32 %v308_v13, %v368_v38  ;;  %v371_v40 = vsub.f32 %v310_v16, %v368_v38  ;;  %v372_v41 = vsub.f32 %v313_v14, %v368_v38  ;;  %v373_v42 = vsub.f32 %v315_v20, %v368_v38 }
  0xf3   : > { %v374_v46 = vsub.f32 %v318_v15, %v368_v38  ;;  %v375_v49 = vsub.f32 %v320_v23, %v368_v38  ;;  %v376_v53 = vsub.f32 %v323_v18, %v368_v38  ;;  %v377_v56 = vsub.f32 %v325_v26, %v368_v38 }
  0xf4   : > { %v378_v43 = vmul.f32 %v370_v39, %v370_v39  ;;  %v379_v44 = vmul.f32 %v371_v40, %v371_v40  ;;  %v380_v47 = vmul.f32 %v372_v41, %v372_v41  ;;  %v381_v50 = vmul.f32 %v373_v42, %v373_v42 }
  0xf5   : > { %v382_v54 = vmul.f32 %v374_v46, %v374_v46  ;;  %v383_v57 = vmul.f32 %v375_v49, %v375_v49  ;;  %v384_v60 = vmul.f32 %v376_v53, %v376_v53  ;;  %v385_v62 = vmul.f32 %v377_v56, %v377_v56 }
  0xf6   : > { %v386_v48 = vadd.f32 %v379_v44, %v378_v43 }
  0xf8   : > { %v387_v51 = vadd.f32 %v386_v48, %v380_v47 }
  0xfa   : > { %v388_v55 = vadd.f32 %v387_v51, %v381_v50 }
  0xfc   : > { %v389_v58 = vadd.f32 %v388_v55, %v382_v54 }
  0xfe   : > { %v390_v61 = vadd.f32 %v389_v58, %v383_v57 }
 0x100   : > { %v391_v63 = vadd.f32 %v390_v61, %v384_v60 }
 0x102   : > { %v392_v1 = vadd.f32 %v391_v63, %v385_v62 }
 0x104   : > { %v393_v2 = vrot.slane %v392_v1, 4 }
 0x106   : > { %v394_v4 = vadd.f32 %v393_v2, %v392_v1 }
 0x108   : > { %v395_v5 = vrot.slane %v394_v4, 2 }
 0x10a   : > { %v396_v7 = vadd.f32 %v395_v5, %v394_v4 }
 0x10c   : > { %v397_v8 = vrot.slane %v396_v7, 1 }
 0x10e   : > { %v398_v10 = vadd.f32 %v397_v8, %v396_v7 }
 0x110   : > { %v406_v11 = vmul.f32 %v405_v9, %v398_v10 }
 0x112   : > { %v407_v12 = vadd.f32 1e-05, %v406_v11 }
 0x114   : > { %746 = vrsqrt.f32 %v407_v12  ;;  %vm414_vm2 = vweird.f32 %v407_v12 }
 0x11a   : > { %v747_v13 = vpop.eup %746 }
 0x11b   : > { %v409_v14 = vmul.f32 %v747_v13, %v407_v12  ;;  %vm415_vm1 = vweird.f32 %v747_v13 }
 0x11c   : > { %vm416_vm3 = vmor %vm414_vm2, %vm415_vm1 }
 0x11d   : > { %v410_v15 = vmul.f32 %v747_v13, %v409_v14 }
 0x11f   : > { %v411_v16 = vmul.f32 0.5, %v410_v15 }
 0x121   : > { %v412_v17 = vsub.f32 1.5, %v411_v16 }
 0x123   : > { %v413_v18 = vmul.f32 %v747_v13, %v412_v17 }
 0x125   : > { %v417_v19 = vsel %vm416_vm3, %v747_v13, %v413_v18 }
 0x126   : > { %v418_v20 = vmul.f32 %v417_v19, %v370_v39  ;;  %v419_v21 = vmul.f32 %v417_v19, %v371_v40  ;;  %v420_v22 = vmul.f32 %v417_v19, %v372_v41  ;;  %v421_v23 = vmul.f32 %v417_v19, %v373_v42 }
 0x127   : > { %v422_v24 = vmul.f32 %v417_v19, %v374_v46  ;;  %v423_v25 = vmul.f32 %v417_v19, %v375_v49  ;;  %v424_v26 = vmul.f32 %v417_v19, %v376_v53  ;;  %v425_v27 = vmul.f32 %v417_v19, %v377_v56 }
 0x128   : > { %v426_v28 = vmul.f32 0.2, %v418_v20  ;;  %v429_v29 = vmul.f32 0.2, %v421_v23  ;;  %v427_v32 = vmul.f32 0.2, %v419_v21 }
 0x129   : > { %v430_v30 = vmul.f32 0.2, %v422_v24  ;;  %v431_v31 = vmul.f32 0.2, %v423_v25  ;;  %v432_v33 = vmul.f32 0.2, %v424_v26 }
 0x12a   : > { %v433_v34 = vmul.f32 0.2, %v425_v27  ;;  %v434_v35 = vmax.f32 %v418_v20, %v426_v28  ;;  %v428_v36 = vmul.f32 0.2, %v420_v22  ;;  %v437_v37 = vmax.f32 %v421_v23, %v429_v29 }
 0x12b   : > { %v438_v38 = vmax.f32 %v422_v24, %v430_v30  ;;  %v439_v39 = vmax.f32 %v423_v25, %v431_v31  ;;  %v440_v40 = vmax.f32 %v424_v26, %v432_v33  ;;  %v435_v42 = vmax.f32 %v419_v21, %v427_v32 }
 0x12c   : > { %442 = vst [vmem:[%s196_s3] sm:$0xff] %v434_v35  ;;  %v441_v41 = vmax.f32 %v425_v27, %v433_v34  ;;  %v436_v43 = vmax.f32 %v420_v22, %v428_v36 }
 0x12d   : > { %445 = vst [vmem:[%s196_s3 + $0x18] sm:$0xff] %v437_v37 }
 0x12e   : > { %446 = vst [vmem:[%s196_s3 + $0x20] sm:$0xff] %v438_v38 }
 0x12f   : > { %447 = vst [vmem:[%s196_s3 + $0x28] sm:$0xff] %v439_v39 }
 0x130   : > { %448 = vst [vmem:[%s196_s3 + $0x30] sm:$0xff] %v440_v40 }
 0x131   : > { %449 = vst [vmem:[%s196_s3 + $0x38] sm:$0xff] %v441_v41 }
 0x132   : > { %443 = vst [vmem:[%s196_s3 + $0x8] sm:$0xff] %v435_v42 }
 0x133   : > { %444 = vst [vmem:[%s196_s3 + $0x10] sm:$0xff] %v436_v43 }
 0x134   : > { %835 = shalt.err (!%p832_p0)
}
 0x135   : > { %s901_s30 = smov 128   ;;  %s902_s7 = smov 8  }
 0x136   : > { %671 = dma.vmem_to_hbm [thread:$0]  (%p1000_p5), %s464_s12, 1024, %s466_s6, %s451_s16, %s901_s30, %s901_s30, %s902_s7  }
 0x137 PF: > { %s480_s15 = sand.u32 1, %s874_s9   ;;  %p682_p3 = pnand %p566_p11, %p967_p6 }
 0x138   : > { %s481_s17 = scalar_lea.sflag [#allocation5], %s480_s15 }
 0x139   : > { %p683_p7 = pneg %p682_p3 }
 0x13b   : > { %869 = dma.done.wait (%p683_p7), %s481_s17, 1024  }
 0x13c   : > { %871 = vsyncadd (%p683_p7), %s481_s17, 4294966272  ;;  %s19_s14 = sadd.s32 1, %s894_s14   ;;  %s1090_s9 = smov %s878_s10 }
 0x13d   : > { %p16_p9 = scmp.ge.s32.totalorder %s19_s14, 4   ;;  %s1091_s10 = smov %s882_s11 }
 0x13e   : > { %s1092_s11 = smov %s1009_s8  ;;  %s1093_s12 = smov %s890_s13 }
 0x13f   : > { %s1094_s13 = smov %s1096_s29  ;;  %18 = sbr.rel (!%p16_p9) target bundleno = 7 (0x7), region = 86 }
 0x144   :  { %487 = vsyncpa [#allocation4], 1 }
 0x145   :  { %489 = vsyncpa [#allocation4 + $0x1], 1 }
 0x146   :  { %490 = vsyncpa [#allocation7], 1 }
 0x147   :  { %491 = vsyncpa [#allocation5], 1 }
 0x148   :  { %493 = vsyncpa [#allocation5 + $0x1], 1 }

</bundles_post_ra>
